<compile_context>
chip_gen: v6e
topology: v6e:2x2x1
jax: 0.10.0
libtpu: 0.0.40
codegen_flags: <defaults>
</compile_context>

<pallas_src>
import jax
import jax.numpy as jnp
from jax.experimental import pallas as pl
from jax.experimental.pallas import tpu as pltpu

_OUT_W = 8  # lane width of the stored output slab (cols 0/1 = q1/q2, rest are zero)


def _round_up(n: int, m: int) -> int:
    return -(-n // m) * m


def _pad_to(x, rows: int, cols: int):
    r, c = x.shape
    return jnp.pad(x, ((0, rows - r), (0, cols - c)))


def _block_diag2(a, b):
    """[[a, 0], [0, b]] -- keeps the two Q-functions independent in fused matmuls."""
    top = jnp.concatenate([a, jnp.zeros((a.shape[0], b.shape[1]), a.dtype)], axis=1)
    bot = jnp.concatenate([jnp.zeros((b.shape[0], a.shape[1]), b.dtype), b], axis=1)
    return jnp.concatenate([top, bot], axis=0)


def _pack_params(p1, p2, obs_dim: int, act_dim: int, dtype):
    """Pack both Q-nets into one (R, C) slab of `dtype`. Returns (slab, row_offsets, C)."""
    h1 = p1["w1"].shape[1]
    h2 = p1["w2"].shape[1]
    # Lane-dense column width, always a multiple of 128 so column slices stay tile-aligned.
    C = _round_up(max(2 * h1, 2 * h2, _OUT_W, 128), 128)

    blocks, offsets = [], {}
    row = 0

    def add(name, mat):
        nonlocal row
        r_pad = _round_up(mat.shape[0], 8)          # keep every block 8-sublane aligned
        blocks.append(_pad_to(mat, r_pad, C))
        offsets[name] = row
        row += r_pad

    # Layer 1: columns = [q1 | q2]; split into obs-rows and act-rows (concat folded away).
    w1 = jnp.concatenate([p1["w1"], p2["w1"]], axis=1)            # (Do+Da, 2*h1)
    b1 = jnp.concatenate([p1["b1"], p2["b1"]])[None, :]           # (1, 2*h1)
    add("w1_obs", w1[:obs_dim])
    add("w1_act", w1[obs_dim:])
    add("b1", b1)
    # Layers 2/3: block-diagonal so q1/q2 stay independent.
    add("w2", _block_diag2(p1["w2"], p2["w2"]))                   # (2*h1, 2*h2)
    add("b2", jnp.concatenate([p1["b2"], p2["b2"]])[None, :])
    add("w3", _block_diag2(p1["w3"], p2["w3"]))                   # (2*h2, 2)
    add("b3", jnp.concatenate([p1["b3"], p2["b3"]])[None, :])

    slab = jnp.concatenate(blocks, axis=0).astype(dtype)
    return slab, offsets, C


def continuous_q_network(obs, act, params_q1, params_q2, *,
                         batch_tile: int = 2048, mxu_dtype=jnp.bfloat16):
    """obs: (B, Do) f32, act: (B, Da) f32.  Returns (q1, q2), each (B, 1) f32.

    mxu_dtype: dtype fed to the MXU (weights slab + activation casts).  bf16 (default) is the
    fast path on v6e/v7x; pass jnp.float32 for bit-faithful f32 matmuls.
    """
    B, Do = obs.shape
    Da = act.shape[1]
    H1 = params_q1["w1"].shape[1]
    H2 = params_q1["w2"].shape[1]
    H1x2, H2x2 = 2 * H1, 2 * H2

    slab, off, C = _pack_params(params_q1, params_q2, Do, Da, mxu_dtype)
    R = slab.shape[0]

    # Balanced batch tiling:
    #  * >= 2 tiles whenever the batch allows it, so the "parallel" axis shards across both
    #    TensorCores on v7x (neutral on 1-TC v5e/v6e);
    #  * even tile count for 2-TC load balance;
    #  * TB derived from cdiv(B, num_tiles) so padding waste is at most 7 rows per tile.
    B8 = _round_up(B, 8)
    min_tiles = 2 if B8 >= 16 else 1
    num_tiles = max(min_tiles, pl.cdiv(B, batch_tile))
    if num_tiles > 1:
        num_tiles = _round_up(num_tiles, 2)
    TB = _round_up(pl.cdiv(B, num_tiles), 8)
    B_pad = TB * num_tiles
    if B_pad != B:
        obs = jnp.pad(obs, ((0, B_pad - B), (0, 0)))
        act = jnp.pad(act, ((0, B_pad - B), (0, 0)))
    grid = (num_tiles,)

    def kernel(obs_ref, act_ref, p_ref, o_ref):
        # Layer 1: concatenation folded into a split matmul on the MXU (bf16 in, f32 acc).
        h = jnp.dot(obs_ref[...].astype(mxu_dtype),
                    p_ref[off["w1_obs"]:off["w1_obs"] + Do, 0:H1x2],
                    preferred_element_type=jnp.float32)
        h = h + jnp.dot(act_ref[...].astype(mxu_dtype),
                        p_ref[off["w1_act"]:off["w1_act"] + Da, 0:H1x2],
                        preferred_element_type=jnp.float32)
        h = jnp.maximum(h + p_ref[off["b1"]:off["b1"] + 1, 0:H1x2].astype(jnp.float32), 0.0)

        # Layer 2 (block-diagonal twin weights).
        h = jnp.dot(h.astype(mxu_dtype),
                    p_ref[off["w2"]:off["w2"] + H1x2, 0:H2x2],
                    preferred_element_type=jnp.float32)
        h = jnp.maximum(h + p_ref[off["b2"]:off["b2"] + 1, 0:H2x2].astype(jnp.float32), 0.0)

        # Output layer: narrow (TB, 8) slab; cols 0/1 carry q1/q2, padded cols are exact 0.
        out = jnp.dot(h.astype(mxu_dtype),
                      p_ref[off["w3"]:off["w3"] + H2x2, 0:_OUT_W],
                      preferred_element_type=jnp.float32)
        o_ref[...] = out + p_ref[off["b3"]:off["b3"] + 1, 0:_OUT_W].astype(jnp.float32)

    flops = 2 * B_pad * (Do * H1x2 + Da * H1x2 + H1x2 * H2x2 + H2x2 * _OUT_W)
    bytes_accessed = (4 * B_pad * (Do + Da)            # f32 inputs
                      + R * C * slab.dtype.itemsize    # resident weight slab
                      + 4 * B_pad * _OUT_W)            # narrow f32 output
    out = pl.pallas_call(
        kernel,
        out_shape=jax.ShapeDtypeStruct((B_pad, _OUT_W), jnp.float32),
        grid=grid,
        in_specs=[
            pl.BlockSpec((TB, Do), lambda i: (i, 0)),
            pl.BlockSpec((TB, Da), lambda i: (i, 0)),
            pl.BlockSpec((R, C), lambda i: (0, 0)),     # weights resident across the grid
        ],
        out_specs=pl.BlockSpec((TB, _OUT_W), lambda i: (i, 0)),
        compiler_params=pltpu.CompilerParams(dimension_semantics=("parallel",)),
        cost_estimate=pl.CostEstimate(flops=flops, transcendentals=0,
                                      bytes_accessed=bytes_accessed),
    )(obs, act, slab)

    q1 = out[:B, 0:1]
    q2 = out[:B, 1:2]
    return q1, q2


def _init_linear(key, in_dim, out_dim):
    """PyTorch nn.Linear default init: U(-1/sqrt(in), 1/sqrt(in)); stored transposed (in, out)."""
    kw, kb = jax.random.split(key)
    bound = 1.0 / jnp.sqrt(jnp.float32(in_dim))
    w = jax.random.uniform(kw, (in_dim, out_dim), jnp.float32, -bound, bound)
    b = jax.random.uniform(kb, (out_dim,), jnp.float32, -bound, bound)
    return w, b


def _reference(obs, act, p1, p2):
    x = jnp.concatenate([obs, act], axis=-1)

    def mlp(p):
        h = jnp.maximum(x @ p["w1"] + p["b1"], 0.0)
        h = jnp.maximum(h @ p["w2"] + p["b2"], 0.0)
        return h @ p["w3"] + p["b3"]

    return mlp(p1), mlp(p2)


if __name__ == "__main__":
    # Small shapes consistent with the module: observation_dim=32, action_dim=8,
    # layers_dim=(64, 64), batch=8, output_dim=1 per Q-head.
    batch, obs_dim, action_dim = 8, 32, 8
    layers_dim = (64, 64)

    key = jax.random.PRNGKey(0)
    k_obs, k_act, k11, k12, k13, k21, k22, k23 = jax.random.split(key, 8)

    obs = jax.random.normal(k_obs, (batch, obs_dim), jnp.float32)
    act = jax.random.normal(k_act, (batch, action_dim), jnp.float32)

    def init_mlp(keys):
        w1, b1 = _init_linear(keys[0], obs_dim + action_dim, layers_dim[0])
        w2, b2 = _init_linear(keys[1], layers_dim[0], layers_dim[1])
        w3, b3 = _init_linear(keys[2], layers_dim[1], 1)
        return {"w1": w1, "b1": b1, "w2": w2, "b2": b2, "w3": w3, "b3": b3}

    params_q1 = init_mlp((k11, k12, k13))
    params_q2 = init_mlp((k21, k22, k23))

    r1, r2 = _reference(obs, act, params_q1, params_q2)

    # Exact-f32 path: must match the reference tightly.
    q1f, q2f = continuous_q_network(obs, act, params_q1, params_q2, mxu_dtype=jnp.float32)
    q1f, q2f = jax.block_until_ready((q1f, q2f))
    assert q1f.shape == (batch, 1) and q2f.shape == (batch, 1)
    assert jnp.allclose(q1f, r1, atol=1e-5, rtol=1e-5), "q1 (f32 path) mismatch vs reference"
    assert jnp.allclose(q2f, r2, atol=1e-5, rtol=1e-5), "q2 (f32 path) mismatch vs reference"

    # Fast bf16-MXU path (default): bf16-level drift allowed.
    q1, q2 = continuous_q_network(obs, act, params_q1, params_q2)
    q1, q2 = jax.block_until_ready((q1, q2))
    assert q1.shape == (batch, 1) and q2.shape == (batch, 1)
    assert jnp.allclose(q1, r1, atol=2e-2, rtol=2e-2), "q1 (bf16 path) mismatch vs reference"
    assert jnp.allclose(q2, r2, atol=2e-2, rtol=2e-2), "q2 (bf16 path) mismatch vs reference"

    print("KERNEL_OK")
</pallas_src>

<mosaic_0001>
module attributes {stable_mosaic.version = 11 : i64} {
  func.func @kernel(%arg0: i32, %arg1: memref<8x32xf32, #tpu.memory_space<vmem>>, %arg2: memref<8x8xf32, #tpu.memory_space<vmem>>, %arg3: memref<320x128xf32, #tpu.memory_space<vmem>>, %arg4: memref<8x8xf32, #tpu.memory_space<vmem>>) attributes {dimension_semantics = [#tpu.dimension_semantics<parallel>], iteration_bounds = array<i64: 1>, scalar_prefetch = 0 : i64, scratch_operands = 0 : i64, tpu.core_type = #tpu.core_type<tc>, window_params = [{transform_indices = @transform_0, window_bounds = array<i64: 8, 32>}, {transform_indices = @transform_1, window_bounds = array<i64: 8, 8>}, {pipeline_mode = #tpu.pipeline_mode<synchronous>, transform_indices = @transform_2, window_bounds = array<i64: 320, 128>}, {transform_indices = @transform_3, window_bounds = array<i64: 8, 8>}]} {
    %c0 = arith.constant 0 : index
    %c0_0 = arith.constant 0 : index
    %0 = vector.load %arg1[%c0, %c0_0] : memref<8x32xf32, #tpu.memory_space<vmem>>, vector<8x32xf32>
    %c0_1 = arith.constant 0 : index
    %c0_2 = arith.constant 0 : index
    %1 = vector.load %arg3[%c0_1, %c0_2] : memref<320x128xf32, #tpu.memory_space<vmem>>, vector<32x128xf32>
    %cst = arith.constant dense<0.000000e+00> : vector<8x128xf32>
    %2 = tpu.matmul %0, %1, %cst {dimension_numbers = #tpu.dot_dimension_numbers<[1], [0], [0], [1], [0, 0, 1, 1], [], []>} : vector<8x32xf32>, vector<32x128xf32>, vector<8x128xf32> -> vector<8x128xf32>
    %c0_3 = arith.constant 0 : index
    %c0_4 = arith.constant 0 : index
    %3 = vector.load %arg2[%c0_3, %c0_4] : memref<8x8xf32, #tpu.memory_space<vmem>>, vector<8x8xf32>
    %c32 = arith.constant 32 : index
    %c0_5 = arith.constant 0 : index
    %4 = vector.load %arg3[%c32, %c0_5] : memref<320x128xf32, #tpu.memory_space<vmem>>, vector<8x128xf32>
    %cst_6 = arith.constant dense<0.000000e+00> : vector<8x128xf32>
    %5 = tpu.matmul %3, %4, %cst_6 {dimension_numbers = #tpu.dot_dimension_numbers<[1], [0], [0], [1], [0, 0, 1, 1], [], []>} : vector<8x8xf32>, vector<8x128xf32>, vector<8x128xf32> -> vector<8x128xf32>
    %6 = arith.addf %2, %5 : vector<8x128xf32>
    %c40 = arith.constant 40 : index
    %c0_7 = arith.constant 0 : index
    %7 = vector.load %arg3[%c40, %c0_7] : memref<320x128xf32, #tpu.memory_space<vmem>>, vector<1x128xf32>
    %8 = vector.broadcast %7 : vector<1x128xf32> to vector<8x128xf32>
    %9 = arith.addf %6, %8 : vector<8x128xf32>
    %cst_8 = arith.constant 0.000000e+00 : f32
    %10 = vector.broadcast %cst_8 : f32 to vector<8x128xf32>
    %11 = arith.maximumf %9, %10 : vector<8x128xf32>
    %c48 = arith.constant 48 : index
    %c0_9 = arith.constant 0 : index
    %12 = vector.load %arg3[%c48, %c0_9] : memref<320x128xf32, #tpu.memory_space<vmem>>, vector<128x128xf32>
    %cst_10 = arith.constant dense<0.000000e+00> : vector<8x128xf32>
    %13 = tpu.matmul %11, %12, %cst_10 {dimension_numbers = #tpu.dot_dimension_numbers<[1], [0], [0], [1], [0, 0, 1, 1], [], []>} : vector<8x128xf32>, vector<128x128xf32>, vector<8x128xf32> -> vector<8x128xf32>
    %c176 = arith.constant 176 : index
    %c0_11 = arith.constant 0 : index
    %14 = vector.load %arg3[%c176, %c0_11] : memref<320x128xf32, #tpu.memory_space<vmem>>, vector<1x128xf32>
    %15 = vector.broadcast %14 : vector<1x128xf32> to vector<8x128xf32>
    %16 = arith.addf %13, %15 : vector<8x128xf32>
    %cst_12 = arith.constant 0.000000e+00 : f32
    %17 = vector.broadcast %cst_12 : f32 to vector<8x128xf32>
    %18 = arith.maximumf %16, %17 : vector<8x128xf32>
    %c184 = arith.constant 184 : index
    %c0_13 = arith.constant 0 : index
    %19 = vector.load %arg3[%c184, %c0_13] : memref<320x128xf32, #tpu.memory_space<vmem>>, vector<128x8xf32>
    %cst_14 = arith.constant dense<0.000000e+00> : vector<8x8xf32>
    %20 = tpu.matmul %18, %19, %cst_14 {dimension_numbers = #tpu.dot_dimension_numbers<[1], [0], [0], [1], [0, 0, 1, 1], [], []>} : vector<8x128xf32>, vector<128x8xf32>, vector<8x8xf32> -> vector<8x8xf32>
    %c312 = arith.constant 312 : index
    %c0_15 = arith.constant 0 : index
    %21 = vector.load %arg3[%c312, %c0_15] : memref<320x128xf32, #tpu.memory_space<vmem>>, vector<1x8xf32>
    %22 = vector.broadcast %21 : vector<1x8xf32> to vector<8x8xf32>
    %23 = arith.addf %20, %22 : vector<8x8xf32>
    %c0_16 = arith.constant 0 : index
    %c0_17 = arith.constant 0 : index
    %24 = vector.load %arg4[%c0_16, %c0_17] : memref<8x8xf32, #tpu.memory_space<vmem>>, vector<8x8xf32>
    tpu.vector_store %arg4[%c0_16, %c0_17], %23 {strides = array<i32>} : memref<8x8xf32, #tpu.memory_space<vmem>>, vector<8x8xf32>,
    return
  }
  func.func @transform_0(%arg0: i32) -> (i32, i32) {
    %c0_i32 = arith.constant 0 : i32
    %c0_i32_0 = arith.constant 0 : i32
    return %arg0, %c0_i32 : i32, i32
  }
  func.func @transform_1(%arg0: i32) -> (i32, i32) {
    %c0_i32 = arith.constant 0 : i32
    %c0_i32_0 = arith.constant 0 : i32
    return %arg0, %c0_i32 : i32, i32
  }
  func.func @transform_2(%arg0: i32) -> (i32, i32) {
    %c0_i32 = arith.constant 0 : i32
    %c0_i32_0 = arith.constant 0 : i32
    %c0_i32_1 = arith.constant 0 : i32
    return %c0_i32, %c0_i32_0 : i32, i32
  }
  func.func @transform_3(%arg0: i32) -> (i32, i32) {
    %c0_i32 = arith.constant 0 : i32
    %c0_i32_0 = arith.constant 0 : i32
    return %arg0, %c0_i32 : i32, i32
  }
}

</mosaic_0001>

<bundles_post_ra>
// kernel: tpu_custom_call.1
= control target key start
LH: loop header
LB: loop body
LE: loop exit
PB: predicated region body
PF: predicated region fallthrough
CT: control target
= control target key end

     0   :  { %8 = vsyncpa [#allocation3], 0  ;;  %s727_s0 = inlined_call_operand.hbm [shape: f32[8,32], index: 0, kind: input, shape index: {}]   ;;  %s728_s1 = inlined_call_operand.hbm [shape: f32[8,8], index: 1, kind: input, shape index: {}]   ;;  %s729_s2 = inlined_call_operand.hbm [shape: f32[320,128], index: 2, kind: input, shape index: {}]   ;;  %s730_s3 = inlined_call_operand.hbm [shape: f32[8,8], index: 3, kind: output, shape index: {}]  }
   0x1   :  { %9 = vsyncpa [#allocation6], 0 }
   0x2   :  { %10 = vsyncpa [#allocation4], 0  ;;  %s640_s12 = smov [#allocation5]   ;;  %s641_s14 = smov [#allocation2]  }
   0x3   :  { %s27_s13 = sshll.u32 %s640_s12, 4  ;;  %s17_s15 = sshll.u32 %s641_s14, 4  ;;  %s28_s13 = int_to_ptr.vmem [resolvable:$true] %s27_s13  ;;  %s18_s15 = int_to_ptr.vmem [resolvable:$true] %s17_s15 }
   0x4   :  { %s562_s16 = scalar_lea.vmem %s28_s13, 128  ;;  %p567_p1 = scmp.lt.s32.totalorder %s28_s13, %s28_s13 }
   0x5   :  { %p563_p0 = scmp.ne.s32.totalorder %s28_s13, %s562_s16  ;;  %p568_p2 = scmp.lt.s32.totalorder %s562_s16, %s562_s16 }
   0x7   :  { %p569_p3 = por %p568_p2, %p567_p1 }
   0x9   :  { %p570_p4 = pnand %p569_p3, %p563_p0 }
   0xb   :  { %573 = shalt.err (!%p570_p4)
}
   0xc   :  { %30 = dma.hbm_to_vmem [thread:$0]  %s728_s1, 128, %s28_s13, [#allocation6]  }
   0xd   :  { %s582_s19 = scalar_lea.vmem %s18_s15, 128  ;;  %p587_p6 = scmp.lt.s32.totalorder %s18_s15, %s18_s15 }
   0xe   :  { %p583_p5 = scmp.ne.s32.totalorder %s18_s15, %s582_s19  ;;  %p588_p7 = scmp.lt.s32.totalorder %s582_s19, %s582_s19 }
  0x10   :  { %p589_p8 = por %p588_p7, %p587_p6 }
  0x12   :  { %p590_p9 = pnand %p589_p8, %p583_p5 }
  0x14   :  { %593 = shalt.err (!%p590_p9)
}
  0x15   :  { %20 = dma.hbm_to_vmem [thread:$0]  %s727_s0, 128, %s18_s15, [#allocation3]  }
  0x16   :  { %s642_s22 = smov [#allocation7]  }
  0x17   :  { %s36_s23 = sshll.u32 %s642_s22, 4  ;;  %s37_s23 = int_to_ptr.vmem [resolvable:$true] %s36_s23 }
  0x18   :  { %s602_s24 = scalar_lea.vmem %s37_s23, 5120  ;;  %p607_p11 = scmp.lt.s32.totalorder %s37_s23, %s37_s23 }
  0x19   :  { %p603_p10 = scmp.ne.s32.totalorder %s37_s23, %s602_s24  ;;  %p608_p12 = scmp.lt.s32.totalorder %s602_s24, %s602_s24 }
  0x1b   :  { %p609_p13 = por %p608_p12, %p607_p11 }
  0x1d   :  { %p610_p0 = pnand %p609_p13, %p603_p10 }
  0x1f   :  { %613 = shalt.err (!%p610_p0)
}
  0x20   :  { %s643_s1 = smov 128   ;;  %s644_s25 = smov 8  }
  0x21   :  { %42 = dma.hbm_to_vmem [thread:$0]  %s729_s2, 5120, %s37_s23, [#allocation6], %s643_s1, %s643_s1, %s644_s25  }
  0x22   :  { %634 = dma.done.wait [#allocation3], 128  }
  0x23   :  { %635 = vsyncadd [#allocation3], 4294967168 }
  0x24   :  { %636 = dma.done.wait [#allocation6], 5248  }
  0x25   :  { %637 = vsyncadd [#allocation6], 4294962048  ;;  %v645_v0 = vmov 0.0   ;;  %vm646_vm0 = vmmov 0   ;;  %vm59_vm1 = vcmask 64512   ;;  %v56_v1 = vld [vmem:[#allocation7 + $0x18] sm:$0xff] }
  0x26   :  { %465 = vmatprep.subr.mxu1 %v645_v0  ;;  %460 = vmatprep.subr.mxu0 %v645_v0  ;;  %v55_v2 = vld [vmem:[#allocation7 + $0x10] sm:$0xff]  ;;  %v58_v3 = vld [vmem:[#allocation7 + $0x20] sm:$0xff]  ;;  %v57_v4 = vld [vmem:[#allocation5] sm:$0xff]  ;;  %vm133_vm2 = vcmask 261120   ;;  %s647_s0 = smov [#allocation8]  }
  0x27   :  { %462 = vmatprep.mubr.msk.f32.mxu0 %vm646_vm0, %v645_v0  ;;  %473 = vmatprep.mubr.msk.f32.mxu1 %vm646_vm0, %v645_v0  ;;  %v54_v5 = vld [vmem:[#allocation7 + $0x8] sm:$0xff]  ;;  %v228_v7 = vld [vmem:[#allocation7 + $0xa0] sm:$0xff]  ;;  %v52_v9 = vld [vmem:[#allocation2] sm:$0xff]  ;;  %s404_s2 = sshll.u32 %s647_s0, 4  ;;  %s405_s2 = int_to_ptr.vmem [resolvable:$true] %s404_s2 }
  0x28   :  { %466 = vmatpush3.msra.mxu1 %v56_v1  ;;  %461 = vmatpush3.msra.mxu0 %v58_v3  ;;  %v229_v6 = vld [vmem:[#allocation7 + $0xa8] sm:$0xff]  ;;  %v53_v8 = vld [vmem:[#allocation7] sm:$0xff]  ;;  %v227_v10 = vld [vmem:[#allocation7 + $0x98] sm:$0xff]  ;;  %s614_s28 = scalar_lea.vmem %s405_s2, 128  ;;  %p619_p2 = scmp.lt.s32.totalorder %s405_s2, %s405_s2 }
  0x29   :  { %467 = vmatprep.subr.mxu1 %v645_v0  ;;  %463 = vmatmul.mubr.msk.f32.vlgmr.msra.gmra.mxu0 %vm59_vm1, %v57_v4  ;;  %v226_v11 = vld [vmem:[#allocation7 + $0x90] sm:$0xff]  ;;  %v225_v12 = vld [vmem:[#allocation7 + $0x88] sm:$0xff]  ;;  %v224_v13 = vld [vmem:[#allocation7 + $0x80] sm:$0xff]  ;;  %p615_p1 = scmp.ne.s32.totalorder %s405_s2, %s614_s28  ;;  %p620_p3 = scmp.lt.s32.totalorder %s614_s28, %s614_s28 }
  0x2a   :  { %468 = vmatpush3.msra.mxu1 %v55_v2  ;;  %476 = vmatprep.subr.mxu0 %v645_v0  ;;  %v223_v14 = vld [vmem:[#allocation7 + $0x78] sm:$0xff]  ;;  %v222_v15 = vld [vmem:[#allocation7 + $0x70] sm:$0xff]  ;;  %v221_v16 = vld [vmem:[#allocation7 + $0x68] sm:$0xff] }
  0x2b   :  { %469 = vmatprep.subr.mxu1 %v645_v0  ;;  %477 = vmatpush3.msra.mxu0 %v229_v6  ;;  %v220_v17 = vld [vmem:[#allocation7 + $0x60] sm:$0xff]  ;;  %v219_v18 = vld [vmem:[#allocation7 + $0x58] sm:$0xff]  ;;  %v218_v19 = vld [vmem:[#allocation7 + $0x50] sm:$0xff]  ;;  %p621_p4 = por %p620_p3, %p619_p2 }
  0x2c   :  { %470 = vmatpush3.msra.mxu1 %v54_v5  ;;  %478 = vmatprep.subr.mxu0 %v645_v0  ;;  %v217_v20 = vld [vmem:[#allocation7 + $0x48] sm:$0xff]  ;;  %v216_v21 = vld [vmem:[#allocation7 + $0x40] sm:$0xff]  ;;  %v215_v22 = vld [vmem:[#allocation7 + $0x38] sm:$0xff] }
  0x2d   :  { %471 = vmatprep.subr.mxu1 %v645_v0  ;;  %479 = vmatpush3.msra.mxu0 %v228_v7  ;;  %v214_v23 = vld [vmem:[#allocation7 + $0x30] sm:$0xff]  ;;  %v320_v25 = vld [vmem:[#allocation7 + $0x128] sm:$0xff]  ;;  %v319_v26 = vld [vmem:[#allocation7 + $0x120] sm:$0xff]  ;;  %p622_p5 = pnand %p621_p4, %p615_p1 }
  0x2e   :  { %472 = vmatpush3.msra.mxu1 %v53_v8  ;;  %480 = vmatprep.subr.mxu0 %v645_v0  ;;  %v321_v24 = vld [vmem:[#allocation7 + $0x130] sm:$0xff]  ;;  %v318_v27 = vld [vmem:[#allocation7 + $0x118] sm:$0xff]  ;;  %v316_v29 = vld [vmem:[#allocation7 + $0x108] sm:$0xff] }
  0x2f   :  { %474 = vmatmul.mubr.msk.f32.vlgmr.msra.gmra.mxu1 %vm133_vm2, %v52_v9  ;;  %481 = vmatpush3.msra.mxu0 %v227_v10  ;;  %v317_v28 = vld [vmem:[#allocation7 + $0x110] sm:$0xff]  ;;  %v315_v30 = vld [vmem:[#allocation7 + $0x100] sm:$0xff]  ;;  %v314_v31 = vld [vmem:[#allocation7 + $0xf8] sm:$0xff] }
  0x30   :  { %482 = vmatprep.subr.mxu0 %v645_v0  ;;  %508 = vmatprep.mubr.msk.f32.mxu0 %vm646_vm0, %v645_v0  ;;  %v313_v32 = vld [vmem:[#allocation7 + $0xf0] sm:$0xff]  ;;  %v312_v33 = vld [vmem:[#allocation7 + $0xe8] sm:$0xff]  ;;  %v311_v34 = vld [vmem:[#allocation7 + $0xe0] sm:$0xff] }
  0x31   :  { %483 = vmatpush3.msra.mxu0 %v226_v11  ;;  %511 = vmatprep.subr.mxu1 %v645_v0  ;;  %v310_v35 = vld [vmem:[#allocation7 + $0xd8] sm:$0xff]  ;;  %v309_v36 = vld [vmem:[#allocation7 + $0xd0] sm:$0xff]  ;;  %v416_v40 = vld [vmem:[#allocation7 + $0x28] ss:$0 sm:$0xff] }
  0x32   :  { %484 = vmatprep.subr.mxu0 %v645_v0  ;;  %543 = vmatprep.mubr.msk.f32.mxu1 %vm646_vm0, %v645_v0  ;;  %v308_v45 = vld [vmem:[#allocation7 + $0xc8] sm:$0xff]  ;;  %v307_v46 = vld [vmem:[#allocation7 + $0xc0] sm:$0xff]  ;;  %v306_v47 = vld [vmem:[#allocation7 + $0xb8] sm:$0xff] }
  0x33   :  { %485 = vmatpush3.msra.mxu0 %v225_v12  ;;  %512 = vmatpush3.msra.mxu1 %v321_v24  ;;  %v417_v48 = vld [vmem:[#allocation7 + $0xb0] ss:$0 sm:$0xff]  ;;  %v418_v53 = vld [vmem:[#allocation7 + $0x138] ss:$0 sm:$0xff] }
  0x34   :  { %486 = vmatprep.subr.mxu0 %v645_v0  ;;  %513 = vmatprep.subr.mxu1 %v645_v0 }
  0x35   :  { %487 = vmatpush3.msra.mxu0 %v224_v13  ;;  %514 = vmatpush3.msra.mxu1 %v320_v25 }
  0x36   :  { %488 = vmatprep.subr.mxu0 %v645_v0  ;;  %515 = vmatprep.subr.mxu1 %v645_v0 }
  0x37   :  { %489 = vmatpush3.msra.mxu0 %v223_v14  ;;  %516 = vmatpush3.msra.mxu1 %v319_v26 }
  0x38   :  { %490 = vmatprep.subr.mxu0 %v645_v0  ;;  %517 = vmatprep.subr.mxu1 %v645_v0 }
  0x39   :  { %491 = vmatpush3.msra.mxu0 %v222_v15  ;;  %518 = vmatpush3.msra.mxu1 %v318_v27 }
  0x3a   :  { %492 = vmatprep.subr.mxu0 %v645_v0  ;;  %519 = vmatprep.subr.mxu1 %v645_v0 }
  0x3b   :  { %493 = vmatpush3.msra.mxu0 %v221_v16  ;;  %520 = vmatpush3.msra.mxu1 %v317_v28 }
  0x3c   :  { %494 = vmatprep.subr.mxu0 %v645_v0  ;;  %521 = vmatprep.subr.mxu1 %v645_v0 }
  0x3d   :  { %495 = vmatpush3.msra.mxu0 %v220_v17  ;;  %522 = vmatpush3.msra.mxu1 %v316_v29 }
  0x3e   :  { %496 = vmatprep.subr.mxu0 %v645_v0  ;;  %523 = vmatprep.subr.mxu1 %v645_v0 }
  0x3f   :  { %497 = vmatpush3.msra.mxu0 %v219_v18  ;;  %524 = vmatpush3.msra.mxu1 %v315_v30 }
  0x40   :  { %498 = vmatprep.subr.mxu0 %v645_v0  ;;  %525 = vmatprep.subr.mxu1 %v645_v0 }
  0x41   :  { %499 = vmatpush3.msra.mxu0 %v218_v19  ;;  %526 = vmatpush3.msra.mxu1 %v314_v31 }
  0x42   :  { %500 = vmatprep.subr.mxu0 %v645_v0  ;;  %527 = vmatprep.subr.mxu1 %v645_v0 }
  0x43   :  { %501 = vmatpush3.msra.mxu0 %v217_v20  ;;  %528 = vmatpush3.msra.mxu1 %v313_v32 }
  0x44   :  { %502 = vmatprep.subr.mxu0 %v645_v0  ;;  %529 = vmatprep.subr.mxu1 %v645_v0 }
  0x45   :  { %503 = vmatpush3.msra.mxu0 %v216_v21  ;;  %530 = vmatpush3.msra.mxu1 %v312_v33 }
  0x46   :  { %504 = vmatprep.subr.mxu0 %v645_v0  ;;  %531 = vmatprep.subr.mxu1 %v645_v0 }
  0x47   :  { %505 = vmatpush3.msra.mxu0 %v215_v22  ;;  %532 = vmatpush3.msra.mxu1 %v311_v34 }
  0x48   :  { %506 = vmatprep.subr.mxu0 %v645_v0  ;;  %533 = vmatprep.subr.mxu1 %v645_v0 }
  0x49   :  { %507 = vmatpush3.msra.mxu0 %v214_v23  ;;  %534 = vmatpush3.msra.mxu1 %v310_v35 }
  0x4a   :  { %535 = vmatprep.subr.mxu1 %v645_v0 }
  0x4b   :  { %536 = vmatpush3.msra.mxu1 %v309_v36 }
  0x4c   :  { %537 = vmatprep.subr.mxu1 %v645_v0 }
  0x4d   :  { %538 = vmatpush3.msra.mxu1 %v308_v45 }
  0x4e   :  { %539 = vmatprep.subr.mxu1 %v645_v0 }
  0x4f   :  { %540 = vmatpush3.msra.mxu1 %v307_v46 }
  0x50   :  { %541 = vmatprep.subr.mxu1 %v645_v0 }
  0x51   :  { %542 = vmatpush3.msra.mxu1 %v306_v47 }
  0xe9   :  { %v129_v37 = vpop.f32.mrf.mxu0 }
  0xeb   :  { %v464_v38 = vpop.f32.mrf.mxu0 }
  0xef   :  { %v203_v39 = vpop.f32.mrf.mxu1 }
  0xf0   :  { %v204_v41 = vadd.f32 %v203_v39, %v129_v37 }
  0xf1   :  { %v475_v42 = vpop.f32.mrf.mxu1 }
  0xf2   :  { %v212_v43 = vadd.f32 %v416_v40, %v204_v41 }
  0xf4   :  { %v213_v44 = vmax.f32 %v212_v43, 0.0 }
  0xf6   :  { %509 = vmatmul.mubr.f32.vlgmr.msra.gmra.mxu0 %v213_v44 }
 0x1b6   :  { %v301_v49 = vpop.f32.mrf.mxu0 }
 0x1b7   :  { %v302_v50 = vadd.f32 %v417_v48, %v301_v49 }
 0x1b8   :  { %v510_v51 = vpop.f32.mrf.mxu0 }
 0x1b9   :  { %v305_v52 = vmax.f32 %v302_v50, 0.0 }
 0x1bb   :  { %544 = vmatmul.mubr.f32.vlgmr.msra.gmra.mxu1 %v305_v52 }
 0x27b   :  { %v393_v54 = vpop.f32.mrf.mxu1 }
 0x27c   :  { %v394_v55 = vadd.f32 %v418_v53, %v393_v54 }
 0x27d   :  { %v545_v56 = vpop.f32.mrf.mxu1 }
 0x27e   :  { %397 = vst.msk [vmem:[#allocation8] sm:$0xff] %vm59_vm1, %v394_v55 }
 0x27f   :  { %625 = shalt.err (!%p622_p5)
}
 0x280   :  { %407 = dma.vmem_to_hbm [thread:$0]  %s405_s2, 128, %s730_s3, [#allocation4]  }
 0x281   :  { %638 = dma.done.wait [#allocation4], 128  }
 0x282   :  { %639 = vsyncadd [#allocation4], 4294967168 }
 0x283   :  { %411 = vsyncpa [#allocation3], 1 }
 0x284   :  { %412 = vsyncpa [#allocation6], 1 }
 0x285   :  { %413 = vsyncpa [#allocation4], 1 }

</bundles_post_ra>
